<compile_context>
chip_gen: v5e
topology: v5e:2x2
jax: 0.10.0
libtpu: 0.0.40
codegen_flags: <defaults>
</compile_context>

<pallas_src>
import functools

import jax
import jax.numpy as jnp
from jax.experimental import pallas as pl
from jax.experimental.pallas import tpu as pltpu


def _perception_kernel(x_ref, w1t_ref, b1_ref, w2_ref, b2_ref, o_ref, *,
                       batch: int, inv_hw: float):
    # x_ref  : (B, C, HW)       f32  -- free reshape of NCHW, DMA'd as-is
    # w1t_ref: (HIDDEN, C)      f32  -- 1x1-conv weights, pre-transposed (tiny, frozen)
    # b1_ref : (HIDDEN, 1)      f32
    # w2_ref : (HIDDEN, N_RKHS) f32  -- projection weights (natural orientation)
    # b2_ref : (1, N_RKHS)      f32
    # o_ref  : (B, N_RKHS)      f32  -- final layout; no wrapper transpose needed

    pooled_cols = []
    for b in range(batch):  # static unroll; at real AMDIM scale grid over B/HW instead
        xb = x_ref[b]                                         # (C, HW) f32
        # 1x1 conv over all positions == one MXU matmul, lane-dense on HW.
        hb = jnp.dot(w1t_ref[...], xb,
                     preferred_element_type=jnp.float32)      # (HIDDEN, HW)
        hb = jnp.maximum(hb + b1_ref[...], 0.0)               # VPU bias + ReLU
        # Global average pool: XLU lane reduce, accumulated in f32.
        pooled_cols.append(jnp.sum(hb, axis=1, keepdims=True))  # (HIDDEN, 1)

    pooled = jnp.concatenate(pooled_cols, axis=1)             # (HIDDEN, B)
    # Tiny in-register transpose (~1 vreg) + f32 1/HW scale (exact placement,
    # valid for non-power-of-two HW as well).
    pooled_t = jnp.transpose(pooled) * jnp.float32(inv_hw)    # (B, HIDDEN)

    # Batched projection to the encoding space; output is lane-dense (N_RKHS).
    out = jnp.dot(pooled_t, w2_ref[...],
                  preferred_element_type=jnp.float32)         # (B, N_RKHS)
    o_ref[...] = (out + b2_ref[...]).astype(o_ref.dtype)


def perception_forward(x_nchw, w1, b1, w2, b2):
    """x_nchw: (B, C, H, W) float32 -> (B, n_rkhs) float32."""
    B, C, H, W = x_nchw.shape
    hw = H * W
    hidden = w1.shape[1]
    n_rkhs = w2.shape[1]

    # --- layout plumbing (free / tiny; no activation relayout, no casts) ----
    x_r = x_nchw.reshape(B, C, hw)          # contiguous NCHW -> (B, C, HW), free
    w1t = w1.T                              # (HIDDEN, C)  tiny frozen weights
    b1c = b1.reshape(hidden, 1)             # (HIDDEN, 1)
    b2r = b2.reshape(1, n_rkhs)             # (1, N_RKHS)

    flops = 2 * B * hw * C * hidden + 2 * B * hidden * n_rkhs
    bytes_accessed = 4 * (x_r.size + w1t.size + b1c.size + w2.size
                          + b2r.size + B * n_rkhs)

    # Whole-array, VMEM-resident blocks; one gridless step (all operands are a
    # few KB).  For real AMDIM activation sizes, tile B/HW with a "parallel"
    # grid axis (v7x: 2 TCs, 64 MiB VMEM) and set vmem_limit_bytes explicitly
    # so the double-buffered working set also fits v5e's 16 MiB scoped default.
    vmem_spec = pl.BlockSpec(memory_space=pltpu.VMEM)
    kernel = functools.partial(_perception_kernel, batch=B, inv_hw=1.0 / hw)

    return pl.pallas_call(
        kernel,
        out_shape=jax.ShapeDtypeStruct((B, n_rkhs), jnp.float32),
        in_specs=[vmem_spec, vmem_spec, vmem_spec, vmem_spec, vmem_spec],
        out_specs=vmem_spec,
        cost_estimate=pl.CostEstimate(flops=flops, transcendentals=0,
                                      bytes_accessed=bytes_accessed),
    )(x_r, w1t, b1c, w2, b2r)


def _reference(x_nchw, w1, b1, w2, b2):
    """Pure-JAX f32 reference for correctness checking."""
    B, C, H, W = x_nchw.shape
    xf = jnp.transpose(x_nchw, (0, 2, 3, 1)).reshape(B, H * W, C)
    h = jnp.maximum(jnp.einsum("bpc,ch->bph", xf, w1) + b1, 0.0)
    pooled = jnp.mean(h, axis=1)  # (B, hidden)
    return pooled @ w2 + b2


if __name__ == "__main__":
    # Small shapes consistent with the forward: NCHW image input,
    # encoding_size (n_rkhs) sized output.
    B, C, H, W = 2, 4, 16, 16
    HIDDEN, N_RKHS = 32, 64

    key = jax.random.PRNGKey(0)
    kx, k1, kb1, k2, kb2 = jax.random.split(key, 5)

    x = jax.random.normal(kx, (B, C, H, W), dtype=jnp.float32)
    # Deterministic synthetic "pretrained" (frozen) encoder parameters.
    w1 = jax.random.normal(k1, (C, HIDDEN), dtype=jnp.float32) * 0.1
    b1 = jax.random.normal(kb1, (HIDDEN,), dtype=jnp.float32) * 0.01
    w2 = jax.random.normal(k2, (HIDDEN, N_RKHS), dtype=jnp.float32) * 0.1
    b2 = jax.random.normal(kb2, (N_RKHS,), dtype=jnp.float32) * 0.01

    fwd = jax.jit(perception_forward)
    out = jax.block_until_ready(fwd(x, w1, b1, w2, b2))
    ref = jax.block_until_ready(_reference(x, w1, b1, w2, b2))

    assert out.shape == (B, N_RKHS), out.shape
    # All-f32 compute path -> tight tolerance vs the f32 reference.
    assert jnp.allclose(out, ref, atol=1e-3, rtol=1e-3), "mismatch vs reference"

    # TODO(synk): the real AMDIM encoder (ResNet-style conv stack restored from
    # a checkpoint via Checkpointer) is replaced by this synthetic encoder;
    # checkpoint loading has no Pallas equivalent.
    print("KERNEL_OK")
</pallas_src>

<mosaic_0001>
module attributes {stable_mosaic.version = 11 : i64} {
  func.func @_perception_kernel(%arg0: memref<2x4x256xf32, #tpu.memory_space<vmem>>, %arg1: memref<32x4xf32, #tpu.memory_space<vmem>>, %arg2: memref<32x1xf32, #tpu.memory_space<vmem>>, %arg3: memref<32x64xf32, #tpu.memory_space<vmem>>, %arg4: memref<1x64xf32, #tpu.memory_space<vmem>>, %arg5: memref<2x64xf32, #tpu.memory_space<vmem>>) attributes {dimension_semantics = [], scalar_prefetch = 0 : i64, scratch_operands = 0 : i64, tpu.core_type = #tpu.core_type<tc>} {
    %c0 = arith.constant 0 : index
    %c0_0 = arith.constant 0 : index
    %c0_1 = arith.constant 0 : index
    %0 = vector.load %arg0[%c0, %c0_0, %c0_1] : memref<2x4x256xf32, #tpu.memory_space<vmem>>, vector<1x4x256xf32>
    %1 = vector.shape_cast %0 : vector<1x4x256xf32> to vector<4x256xf32>
    %c0_2 = arith.constant 0 : index
    %c0_3 = arith.constant 0 : index
    %2 = vector.load %arg1[%c0_2, %c0_3] : memref<32x4xf32, #tpu.memory_space<vmem>>, vector<32x4xf32>
    %cst = arith.constant dense<0.000000e+00> : vector<32x256xf32>
    %3 = tpu.matmul %2, %1, %cst {dimension_numbers = #tpu.dot_dimension_numbers<[1], [0], [0], [1], [0, 0, 1, 1], [], []>} : vector<32x4xf32>, vector<4x256xf32>, vector<32x256xf32> -> vector<32x256xf32>
    %c0_4 = arith.constant 0 : index
    %c0_5 = arith.constant 0 : index
    %4 = vector.load %arg2[%c0_4, %c0_5] : memref<32x1xf32, #tpu.memory_space<vmem>>, vector<32x1xf32>
    %5 = vector.broadcast %4 : vector<32x1xf32> to vector<32x256xf32>
    %6 = arith.addf %3, %5 : vector<32x256xf32>
    %cst_6 = arith.constant 0.000000e+00 : f32
    %7 = vector.broadcast %cst_6 : f32 to vector<32x256xf32>
    %8 = arith.maximumf %6, %7 : vector<32x256xf32>
    %cst_7 = arith.constant dense<0.000000e+00> : vector<32xf32>
    %9 = vector.multi_reduction <add>, %8, %cst_7 [1] : vector<32x256xf32> to vector<32xf32>
    %10 = vector.shape_cast %9 : vector<32xf32> to vector<32x1xf32>
    %c1 = arith.constant 1 : index
    %c0_8 = arith.constant 0 : index
    %c0_9 = arith.constant 0 : index
    %11 = vector.load %arg0[%c1, %c0_8, %c0_9] : memref<2x4x256xf32, #tpu.memory_space<vmem>>, vector<1x4x256xf32>
    %12 = vector.shape_cast %11 : vector<1x4x256xf32> to vector<4x256xf32>
    %c0_10 = arith.constant 0 : index
    %c0_11 = arith.constant 0 : index
    %13 = vector.load %arg1[%c0_10, %c0_11] : memref<32x4xf32, #tpu.memory_space<vmem>>, vector<32x4xf32>
    %cst_12 = arith.constant dense<0.000000e+00> : vector<32x256xf32>
    %14 = tpu.matmul %13, %12, %cst_12 {dimension_numbers = #tpu.dot_dimension_numbers<[1], [0], [0], [1], [0, 0, 1, 1], [], []>} : vector<32x4xf32>, vector<4x256xf32>, vector<32x256xf32> -> vector<32x256xf32>
    %c0_13 = arith.constant 0 : index
    %c0_14 = arith.constant 0 : index
    %15 = vector.load %arg2[%c0_13, %c0_14] : memref<32x1xf32, #tpu.memory_space<vmem>>, vector<32x1xf32>
    %16 = vector.broadcast %15 : vector<32x1xf32> to vector<32x256xf32>
    %17 = arith.addf %14, %16 : vector<32x256xf32>
    %cst_15 = arith.constant 0.000000e+00 : f32
    %18 = vector.broadcast %cst_15 : f32 to vector<32x256xf32>
    %19 = arith.maximumf %17, %18 : vector<32x256xf32>
    %cst_16 = arith.constant dense<0.000000e+00> : vector<32xf32>
    %20 = vector.multi_reduction <add>, %19, %cst_16 [1] : vector<32x256xf32> to vector<32xf32>
    %21 = vector.shape_cast %20 : vector<32xf32> to vector<32x1xf32>
    %22 = tpu.concatenate %10, %21 in 1 : vector<32x1xf32>, vector<32x1xf32> -> vector<32x2xf32>
    %23 = tpu.transpose %22, [1, 0] : vector<32x2xf32> -> vector<2x32xf32>
    %cst_17 = arith.constant 3.906250e-03 : f32
    %24 = vector.broadcast %cst_17 : f32 to vector<2x32xf32>
    %25 = arith.mulf %23, %24 : vector<2x32xf32>
    %c0_18 = arith.constant 0 : index
    %c0_19 = arith.constant 0 : index
    %26 = vector.load %arg3[%c0_18, %c0_19] : memref<32x64xf32, #tpu.memory_space<vmem>>, vector<32x64xf32>
    %cst_20 = arith.constant dense<0.000000e+00> : vector<2x64xf32>
    %27 = tpu.matmul %25, %26, %cst_20 {dimension_numbers = #tpu.dot_dimension_numbers<[1], [0], [0], [1], [0, 0, 1, 1], [], []>} : vector<2x32xf32>, vector<32x64xf32>, vector<2x64xf32> -> vector<2x64xf32>
    %c0_21 = arith.constant 0 : index
    %c0_22 = arith.constant 0 : index
    %28 = vector.load %arg4[%c0_21, %c0_22] : memref<1x64xf32, #tpu.memory_space<vmem>>, vector<1x64xf32>
    %29 = vector.broadcast %28 : vector<1x64xf32> to vector<2x64xf32>
    %30 = arith.addf %27, %29 : vector<2x64xf32>
    %c0_23 = arith.constant 0 : index
    %c0_24 = arith.constant 0 : index
    %31 = vector.load %arg5[%c0_23, %c0_24] : memref<2x64xf32, #tpu.memory_space<vmem>>, vector<2x64xf32>
    tpu.vector_store %arg5[%c0_23, %c0_24], %30 {strides = array<i32>} : memref<2x64xf32, #tpu.memory_space<vmem>>, vector<2x64xf32>,
    return
  }
}

</mosaic_0001>

<bundles_post_ra>
// kernel: perception_forward.1
= control target key start
LH: loop header
LB: loop body
LE: loop exit
PB: predicated region body
PF: predicated region fallthrough
CT: control target
= control target key end

     0   :  { %v380_v1 = vmov 0   ;;  %s484_s0 = inlined_call_operand.vmem [shape: f32[2,4,256], index: 0, kind: input, shape index: {}]   ;;  %s485_s1 = inlined_call_operand.vmem [shape: f32[32,4], index: 1, kind: input, shape index: {}]   ;;  %s486_s2 = inlined_call_operand.vmem [shape: f32[32,1], index: 2, kind: input, shape index: {}]   ;;  %s487_s3 = inlined_call_operand.vmem [shape: f32[32,64], index: 3, kind: input, shape index: {}]   ;;  %s488_s4 = inlined_call_operand.vmem [shape: f32[1,64], index: 4, kind: input, shape index: {}]   ;;  %s489_s5 = inlined_call_operand.hbm [shape: f32[2,64], index: 5, kind: output, shape index: {}]  }
   0x1   :  { %v21_v0 = vld [vmem:[%s484_s0] sm:$0xff]  ;;  %351 = vset.pattern.permute.xlu0 %v380_v1  ;;  %352 = vset.pattern.permute.xlu1 %v380_v1  ;;  %v28_v3 = vld [vmem:[%s486_s2 + $0x10] sm:$0xff] }
   0x2   :  { %51 = vst [vmem:[#allocation1] ss:$2 sm:$0xff] %v21_v0  ;;  %v26_v2 = vld [vmem:[%s486_s2] sm:$0xff] }
   0x3   :  { %32 = vperm.xlu0 %351, %v26_v2  }
   0x4   :  { %10 = vsyncpa [#allocation3], 0  ;;  %42 = vperm.xlu1 %352, %v28_v3   ;;  %vm67_vm0 = vcmask 1043456   ;;  %v336_v4 = vld [vmem:[%s484_s0 + $0x8] sm:$0xff]  ;;  %v22_v5 = vld [vmem:[%s485_s1] sm:$0xff]  ;;  %vm54_vm1 = vcmask 31744  }
   0x5   :  { %v27_v6 = vld [vmem:[%s486_s2 + $0x8] sm:$0xff]  ;;  %v29_v9 = vld [vmem:[%s486_s2 + $0x18] sm:$0xff]  ;;  %v24_v13 = vld [vmem:[%s485_s1 + $0x10] sm:$0xff]  ;;  %vm238_vm2 = vcmask 7168   ;;  %vm284_vm3 = vcmask 261120   ;;  %s381_s19 = smov [#allocation2]  }
   0x6   :  { %v23_v10 = vld [vmem:[%s485_s1 + $0x8] sm:$0xff]  ;;  %v25_v14 = vld [vmem:[%s485_s1 + $0x18] sm:$0xff]  ;;  %s315_s20 = sshll.u32 %s381_s19, 4  ;;  %s317_s23 = sshll.u32 %s489_s5, 4  ;;  %vm308_vm4 = vcmask 517120   ;;  %s316_s20 = int_to_ptr.vmem [resolvable:$true] %s315_s20  ;;  %s318_s23 = int_to_ptr.hbm [resolvable:$true] %s317_s23 }
   0x9   :  { %v52_v7 = vld.sshfl [vmem:[#allocation1] sm:$0xff pattern:$0x75316420]  ;;  %v53_v8 = vld.sshfl [vmem:[#allocation1 + $0x8] sm:$0xff pattern:$0x75316420] }
   0xa   :  { %326 = vmatpush.msk.msra.mxu0 %vm67_vm0, %v52_v7  ;;  %331 = vmatpush.msk.msra.mxu1 %vm67_vm0, %v53_v8  ;;  %153 = vst [vmem:[#allocation1] ss:$2 sm:$0xff] %v336_v4 }
   0xb   :  { %327 = vmatmul.msk.f32.vlgmr.msra.gmra.mxu0 %vm54_vm1, %v22_v5  ;;  %332 = vmatmul.msk.f32.vlgmr.msra.gmra.mxu1 %vm54_vm1, %v22_v5 }
   0xc   :  { %37 = vperm.xlu0 %351, %v27_v6   ;;  %47 = vperm.xlu1 %352, %v29_v9  }
  0x11   :  { %v154_v11 = vld.sshfl [vmem:[#allocation1] sm:$0xff pattern:$0x75316420]  ;;  %v155_v12 = vld.sshfl [vmem:[#allocation1 + $0x8] sm:$0xff pattern:$0x75316420] }
  0x12   :  { %337 = vmatpush.msk.msra.mxu2 %vm67_vm0, %v154_v11  ;;  %342 = vmatpush.msk.msra.mxu3 %vm67_vm0, %v155_v12 }
  0x13   :  { %328 = vmatmul.msk.f32.gmra.mxu0 %vm54_vm1, %v23_v10  ;;  %333 = vmatmul.msk.f32.gmra.mxu1 %vm54_vm1, %v23_v10 }
  0x14   :  { %338 = vmatmul.msk.f32.vlgmr.msra.gmra.mxu2 %vm54_vm1, %v22_v5  ;;  %343 = vmatmul.msk.f32.vlgmr.msra.gmra.mxu3 %vm54_vm1, %v22_v5 }
  0x1b   :  { %329 = vmatmul.msk.f32.gmra.mxu0 %vm54_vm1, %v24_v13  ;;  %334 = vmatmul.msk.f32.gmra.mxu1 %vm54_vm1, %v24_v13 }
  0x1c   :  { %339 = vmatmul.msk.f32.gmra.mxu2 %vm54_vm1, %v23_v10  ;;  %344 = vmatmul.msk.f32.gmra.mxu3 %vm54_vm1, %v23_v10 }
  0x23   :  { %330 = vmatmul.msk.f32.gmra.mxu0 %vm54_vm1, %v25_v14  ;;  %335 = vmatmul.msk.f32.gmra.mxu1 %vm54_vm1, %v25_v14 }
  0x24   :  { %340 = vmatmul.msk.f32.gmra.mxu2 %vm54_vm1, %v24_v13  ;;  %345 = vmatmul.msk.f32.gmra.mxu3 %vm54_vm1, %v24_v13 }
  0x2c   :  { %341 = vmatmul.msk.f32.gmra.mxu2 %vm54_vm1, %v25_v14  ;;  %346 = vmatmul.msk.f32.gmra.mxu3 %vm54_vm1, %v25_v14  ;;  %v279_v14 = vld [vmem:[%s487_s3 + $0x18] sm:$0xff] }
  0x2d   :  { %300 = vmatpush.msrb.mxu0 %v279_v14 }
  0x75   :  { %v33_v15 = vpop.permute.xlu0 %32 }
  0x76   :  { %v43_v37 = vpop.permute.xlu1 %42 }
  0x7e   :  { %v38_v23 = vpop.permute.xlu0 %37  ;;  %v48_v54 = vpop.permute.xlu1 %47 }
  0x88   :  { %v89_v16 = vpop.f32.mrf.mxu0  ;;  %v118_v17 = vpop.f32.mrf.mxu1 }
  0x89   :  { %v90_v18 = vadd.f32 %v89_v16, %v33_v15  ;;  %v119_v19 = vadd.f32 %v118_v17, %v33_v15  ;;  %v277_v16 = vld [vmem:[%s487_s3 + $0x8] sm:$0xff]  ;;  %v276_v17 = vld [vmem:[%s487_s3] sm:$0xff] }
  0x8b   :  { %v130_v20 = vmax.f32 %v90_v18, 0.0  ;;  %v131_v21 = vmax.f32 %v119_v19, 0.0 }
  0x8d   :  { %v138_v22 = vadd.f32 %v131_v21, %v130_v20 }
  0x8f   :  { %139 = vadd.xlane.f32.xlu2 %v138_v22 }
  0x90   :  { %v92_v24 = vpop.f32.mrf.mxu0  ;;  %v121_v25 = vpop.f32.mrf.mxu1 }
  0x91   :  { %v93_v26 = vadd.f32 %v92_v24, %v38_v23  ;;  %v122_v27 = vadd.f32 %v121_v25, %v38_v23 }
  0x93   :  { %v132_v28 = vmax.f32 %v93_v26, 0.0  ;;  %v133_v29 = vmax.f32 %v122_v27, 0.0 }
  0x95   :  { %v141_v30 = vadd.f32 %v133_v29, %v132_v28  ;;  %v353_v29 = vld [vmem:[%s488_s4] ss:$0 sm:$0xff] }
  0x97   :  { %v177_v31 = vpop.f32.mrf.mxu2  ;;  %v206_v32 = vpop.f32.mrf.mxu3  ;;  %142 = vadd.xlane.f32.xlu0 %v141_v30 }
  0x98   :  { %v178_v33 = vadd.f32 %v177_v31, %v33_v15  ;;  %v207_v34 = vadd.f32 %v206_v32, %v33_v15  ;;  %v95_v35 = vpop.f32.mrf.mxu0  ;;  %v124_v36 = vpop.f32.mrf.mxu1  ;;  %v278_v15 = vld [vmem:[%s487_s3 + $0x10] sm:$0xff] }
  0x99   :  { %v96_v40 = vadd.f32 %v95_v35, %v43_v37  ;;  %v125_v41 = vadd.f32 %v124_v36, %v43_v37  ;;  %301 = vmatpush.msrb.mxu0 %v278_v15 }
  0x9a   :  { %v218_v38 = vmax.f32 %v178_v33, 0.0  ;;  %v219_v39 = vmax.f32 %v207_v34, 0.0 }
  0x9b   :  { %v134_v43 = vmax.f32 %v96_v40, 0.0  ;;  %v135_v44 = vmax.f32 %v125_v41, 0.0  ;;  %302 = vmatpush.msrb.mxu0 %v277_v16 }
  0x9c   :  { %v226_v42 = vadd.f32 %v219_v39, %v218_v38 }
  0x9d   :  { %v144_v53 = vadd.f32 %v135_v44, %v134_v43  ;;  %303 = vmatpush.msrb.mxu0 %v276_v17 }
  0x9e   :  { %227 = vadd.xlane.f32.xlu2 %v226_v42 }
  0x9f   :  { %v180_v45 = vpop.f32.mrf.mxu2  ;;  %v209_v46 = vpop.f32.mrf.mxu3 }
  0xa0   :  { %v181_v47 = vadd.f32 %v180_v45, %v38_v23  ;;  %v210_v48 = vadd.f32 %v209_v46, %v38_v23  ;;  %v98_v49 = vpop.f32.mrf.mxu0  ;;  %v127_v50 = vpop.f32.mrf.mxu1 }
  0xa1   :  { %v99_v55 = vadd.f32 %v98_v49, %v48_v54  ;;  %v128_v56 = vadd.f32 %v127_v50, %v48_v54 }
  0xa2   :  { %v220_v51 = vmax.f32 %v181_v47, 0.0  ;;  %v221_v52 = vmax.f32 %v210_v48, 0.0 }
  0xa3   :  { %v136_v60 = vmax.f32 %v99_v55, 0.0  ;;  %v137_v61 = vmax.f32 %v128_v56, 0.0 }
  0xa4   :  { %v229_v57 = vadd.f32 %v221_v52, %v220_v51 }
  0xa5   :  { %v147_v0 = vadd.f32 %v137_v61, %v136_v60 }
  0xa6   :  { %230 = vadd.xlane.f32.xlu1 %v229_v57  ;;  %145 = vadd.xlane.f32.xlu2 %v144_v53 }
  0xa7   :  { %v183_v58 = vpop.f32.mrf.mxu2  ;;  %v212_v59 = vpop.f32.mrf.mxu3 }
  0xa8   :  { %v184_v62 = vadd.f32 %v183_v58, %v43_v37  ;;  %v213_v63 = vadd.f32 %v212_v59, %v43_v37 }
  0xaa   :  { %v222_v1 = vmax.f32 %v184_v62, 0.0  ;;  %v223_v2 = vmax.f32 %v213_v63, 0.0 }
  0xac   :  { %v232_v7 = vadd.f32 %v223_v2, %v222_v1 }
  0xae   :  { %148 = vadd.xlane.f32.xlu2 %v147_v0 }
  0xaf   :  { %v186_v3 = vpop.f32.mrf.mxu2  ;;  %v215_v4 = vpop.f32.mrf.mxu3 }
  0xb0   :  { %v187_v5 = vadd.f32 %v186_v3, %v48_v54  ;;  %v216_v6 = vadd.f32 %v215_v4, %v48_v54 }
  0xb2   :  { %v224_v8 = vmax.f32 %v187_v5, 0.0  ;;  %v225_v9 = vmax.f32 %v216_v6, 0.0 }
  0xb4   :  { %v235_v10 = vadd.f32 %v225_v9, %v224_v8 }
  0xb6   :  { %233 = vadd.xlane.f32.xlu2 %v232_v7 }
  0xbe   :  { %236 = vadd.xlane.f32.xlu2 %v235_v10 }
 0x102   :  { %v140_v11 = vpop.xlane.xlu2 %139 }
 0x10a   :  { %v143_v18 = vpop.xlane.xlu0 %142 }
 0x111   :  { %v228_v12 = vpop.xlane.xlu2 %227 }
 0x112   :  { %v239_v13 = vsel %vm238_vm2, %v140_v11, %v228_v12 }
 0x113   :  { %243 = vxpose.xlu2.b32.start [1/4] (short) (narrow) %v239_v13, 8 }
 0x119   :  { %v231_v19 = vpop.xlane.xlu1 %230  ;;  %v146_v20 = vpop.xlane.xlu2 %145 }
 0x11a   :  { %v240_v21 = vsel %vm238_vm2, %v143_v18, %v231_v19 }
 0x11b   :  { %244 = vxpose.xlu2.b32.cont [2/4] (short) (narrow) %v240_v21, 8 }
 0x121   :  { %v149_v22 = vpop.xlane.xlu2 %148 }
 0x129   :  { %v234_v23 = vpop.xlane.xlu2 %233 }
 0x12a   :  { %v241_v24 = vsel %vm238_vm2, %v146_v20, %v234_v23 }
 0x12b   :  { %245 = vxpose.xlu2.b32.cont [3/4] (short) (narrow) %v241_v24, 8 }
 0x131   :  { %v237_v25 = vpop.xlane.xlu2 %236 }
 0x132   :  { %v242_v26 = vsel %vm238_vm2, %v149_v22, %v237_v25 }
 0x133   :  { %246 = vxpose.xlu2.b32.end [4/4] (short) (narrow) %v242_v26, 8 }
 0x1b4   :  { %v259_v27 = vpop.trf.xlu2 }
 0x1b5   :  { %v275_v28 = vmul.f32 0.00390625, %v259_v27 }
 0x1b7   :  { %347 = vmatmul.msk.f32.vlgmr.msrb.gmra.mxu0 %vm284_vm3, %v275_v28 }
 0x234   :  { %v305_v30 = vpop.f32.mrf.mxu0 }
 0x235   :  { %v306_v31 = vadd.f32 %v353_v29, %v305_v30 }
 0x237   :  { %309 = vst.msk [vmem:[#allocation2] sm:$0x3] %vm308_vm4, %v306_v31 }
 0x238   :  { %320 = dma.vmem_to_hbm [thread:$0]  %s316_s20, 32, %s318_s23, [#allocation3]  }
 0x239   :  { %378 = dma.done.wait [#allocation3], 32  }
 0x23a   :  { %379 = vsyncadd [#allocation3], 4294967264 }
 0x23b   :  { %325 = vsyncpa [#allocation3], 1 }

</bundles_post_ra>
